<compile_context>
chip_gen: v7x
topology: tpu7x:2x2x1
jax: 0.10.0
libtpu: 0.0.40
codegen_flags: <defaults>
</compile_context>

<pallas_src>
import jax
import jax.numpy as jnp
from jax import lax
from jax.experimental import pallas as pl
from jax.experimental.pallas import tpu as pltpu

# ----------------------------- configuration -----------------------------
HIDDEN_SIZE   = 32   # __C.HIDDEN_SIZE
FLAT_MLP_SIZE = 32   # __C.FLAT_MLP_SIZE
FLAT_GLIMPSES = 2    # __C.FLAT_GLIMPSES
FLAT_OUT_SIZE = 64   # __C.FLAT_OUT_SIZE
BATCH = 2
SEQ   = 8

LANES = 128
# Row offsets inside the packed weight slab (all multiples of 8 -> tile aligned).
_R_W1   = 0
_R_W2   = _R_W1 + HIDDEN_SIZE                       # 32
_R_WM   = _R_W2 + FLAT_MLP_SIZE                     # 64
_W_ROWS = _R_WM + FLAT_GLIMPSES * HIDDEN_SIZE       # 128
_B_ROWS = 8


# --------------------- one-time host-side parameter packing ---------------------
def pack_attflat_params(params):
    """Pack w1/w2/wm and b1/b2/bm into two (8,128)-aligned f32 DMA slabs.

    Call once at parameter-load time (NOT in the per-call path).
    """
    H, M, G, F = HIDDEN_SIZE, FLAT_MLP_SIZE, FLAT_GLIMPSES, FLAT_OUT_SIZE
    wslab = jnp.zeros((_W_ROWS, LANES), jnp.float32)
    wslab = wslab.at[_R_W1:_R_W1 + H, :M].set(params["w1"])
    wslab = wslab.at[_R_W2:_R_W2 + M, :G].set(params["w2"])
    # wm is [G*H, F], already glimpse-major (matches torch.cat(att_list, dim=1)).
    wslab = wslab.at[_R_WM:_R_WM + G * H, :F].set(params["wm"])

    bslab = jnp.zeros((_B_ROWS, LANES), jnp.float32)
    bslab = bslab.at[0, :M].set(params["b1"].reshape(M))
    bslab = bslab.at[1, :G].set(params["b2"].reshape(G))
    bslab = bslab.at[2, :F].set(params["bm"].reshape(F))
    return wslab, bslab


# ------------------------------- kernel ----------------------------------
def _attflat_kernel(valid_len_ref, x_ref, wslab_ref, bslab_ref, o_ref):
    H, M, G, F = HIDDEN_SIZE, FLAT_MLP_SIZE, FLAT_GLIMPSES, FLAT_OUT_SIZE
    B, S, _ = x_ref.shape

    # Static sub-views of the packed parameter slabs (no extra DMA streams).
    w1 = wslab_ref[_R_W1:_R_W1 + H, :M]          # [H, M]
    w2 = wslab_ref[_R_W2:_R_W2 + M, :G]          # [M, G]
    b1 = bslab_ref[0:1, :M]                      # [1, M]
    b2 = bslab_ref[1:2, :G]                      # [1, G]
    bm = bslab_ref[2:3, :F]                      # [1, F]

    x3 = x_ref[...]                              # [B, S, H]
    x2 = x3.reshape(B * S, H)                    # leading-dim merge, lane dim unchanged

    # MLP: Linear(H->M) + ReLU (+ dropout: identity at eval) + Linear(M->G),
    # run once over all B*S rows.
    h = jnp.maximum(jnp.dot(x2, w1, preferred_element_type=jnp.float32) + b1, 0.0)
    att2 = jnp.dot(h, w2, preferred_element_type=jnp.float32) + b2       # [B*S, G]

    # Padding mask rebuilt in-kernel from the SMEM valid-length scalars.
    row_ids = lax.broadcasted_iota(jnp.int32, (S, G), 0)                 # [S, G]

    rows = []
    for b in range(B):                           # B is tiny: static unroll
        att_b = att2[b * S:(b + 1) * S, :]       # [S, G], 8-row aligned sublane slice
        # masked_fill(x_mask, -1e9): padding positions are s >= valid_len[b].
        att_b = jnp.where(row_ids < valid_len_ref[b], att_b, jnp.float32(-1e9))

        # Exact softmax over the sequence axis (no approx reciprocal).
        att_b = att_b - jnp.max(att_b, axis=0, keepdims=True)
        e = jnp.exp(att_b)
        att_b = e / jnp.sum(e, axis=0, keepdims=True)                    # [S, G]

        # Per-glimpse pooling + linear_merge (glimpse-major, matching torch.cat).
        x_b = x3[b]                              # [S, H]
        out_b = bm                               # [1, F]
        for g in range(G):
            pooled = jnp.sum(att_b[:, g:g + 1] * x_b, axis=0, keepdims=True)   # [1, H]
            wm_g = wslab_ref[_R_WM + g * H:_R_WM + (g + 1) * H, :F]            # [H, F]
            out_b = out_b + jnp.dot(pooled, wm_g, preferred_element_type=jnp.float32)
        rows.append(out_b)

    o_ref[...] = jnp.concatenate(rows, axis=0).astype(o_ref.dtype)       # [B, F]


# ------------------------------- wrapper ----------------------------------
def att_flat(x, valid_len, wslab, bslab):
    """x: [B, S, H] f32; valid_len: [B] int32 (number of unmasked positions).

    wslab/bslab come from pack_attflat_params (done once at load time).
    """
    B, S, H = x.shape
    F = FLAT_OUT_SIZE

    grid_spec = pltpu.PrefetchScalarGridSpec(
        num_scalar_prefetch=1,                    # valid_len -> SMEM
        grid=(1,),                                # single invocation
        in_specs=[
            pl.BlockSpec((B, S, H), lambda i, vl: (0, 0, 0)),          # x
            pl.BlockSpec((_W_ROWS, LANES), lambda i, vl: (0, 0)),      # packed weights
            pl.BlockSpec((_B_ROWS, LANES), lambda i, vl: (0, 0)),      # packed biases
        ],
        out_specs=pl.BlockSpec((B, F), lambda i, vl: (0, 0)),
    )
    return pl.pallas_call(
        _attflat_kernel,
        grid_spec=grid_spec,
        out_shape=jax.ShapeDtypeStruct((B, F), jnp.float32),
    )(valid_len.astype(jnp.int32), x, wslab, bslab)


# ------------------------- pure-JAX reference ------------------------------
def att_flat_ref(x, x_mask, p):
    B, S, H = x.shape
    G = p["w2"].shape[1]
    hi = lax.Precision.HIGHEST
    hidden = jax.nn.relu(jnp.dot(x, p["w1"], precision=hi) + p["b1"])   # [B,S,M]
    att = jnp.dot(hidden, p["w2"], precision=hi) + p["b2"]              # [B,S,G]
    att = jnp.where(x_mask.reshape(B, S, 1), -1e9, att)
    att = jax.nn.softmax(att, axis=1)
    pooled = jnp.einsum("bsg,bsh->bgh", att, x, precision=hi).reshape(B, G * H)
    return jnp.dot(pooled, p["wm"], precision=hi) + p["bm"]


# --------------------------------- main ------------------------------------
if __name__ == "__main__":
    key = jax.random.PRNGKey(0)
    k_x, k_w1, k_b1, k_w2, k_b2, k_wm, k_bm = jax.random.split(key, 7)

    x = jax.random.normal(k_x, (BATCH, SEQ, HIDDEN_SIZE), dtype=jnp.float32)

    # Padding mask: batch 0 full, batch 1 has the last 3 positions masked.
    valid_len = jnp.array([SEQ, SEQ - 3], dtype=jnp.int32)
    seq_ids = jnp.arange(SEQ)
    x_mask = (seq_ids[None, :] >= valid_len[:, None]).reshape(BATCH, 1, 1, SEQ)

    params = {
        "w1": 0.1 * jax.random.normal(k_w1, (HIDDEN_SIZE, FLAT_MLP_SIZE), jnp.float32),
        "b1": 0.1 * jax.random.normal(k_b1, (1, FLAT_MLP_SIZE), jnp.float32),
        "w2": 0.1 * jax.random.normal(k_w2, (FLAT_MLP_SIZE, FLAT_GLIMPSES), jnp.float32),
        "b2": 0.1 * jax.random.normal(k_b2, (1, FLAT_GLIMPSES), jnp.float32),
        "wm": 0.1 * jax.random.normal(k_wm, (HIDDEN_SIZE * FLAT_GLIMPSES, FLAT_OUT_SIZE), jnp.float32),
        "bm": 0.1 * jax.random.normal(k_bm, (1, FLAT_OUT_SIZE), jnp.float32),
    }

    # One-time parameter packing (load time, not per call).
    wslab, bslab = pack_attflat_params(params)

    out = att_flat(x, valid_len, wslab, bslab)
    out = jax.block_until_ready(out)

    ref = att_flat_ref(x, x_mask, params)
    assert out.shape == (BATCH, FLAT_OUT_SIZE)
    # 5e-3 tolerance: allows for MXU f32 accumulation-order differences vs. the
    # HIGHEST-precision XLA reference; any real logic bug is O(0.1) or larger.
    assert jnp.allclose(out, ref, atol=5e-3, rtol=5e-3), "mismatch vs pure-JAX reference"

    print("KERNEL_OK")
</pallas_src>

<mosaic_0001>
module attributes {stable_mosaic.version = 11 : i64} {
  func.func @_attflat_kernel(%arg0: i32, %arg1: memref<2xi32, #tpu.memory_space<smem>>, %arg2: memref<2x8x32xf32, #tpu.memory_space<vmem>>, %arg3: memref<128x128xf32, #tpu.memory_space<vmem>>, %arg4: memref<8x128xf32, #tpu.memory_space<vmem>>, %arg5: memref<2x64xf32, #tpu.memory_space<vmem>>) attributes {dimension_semantics = [#tpu.dimension_semantics<arbitrary>], iteration_bounds = array<i64: 1>, scalar_prefetch = 1 : i64, scratch_operands = 0 : i64, tpu.core_type = #tpu.core_type<tc>, window_params = [{pipeline_mode = #tpu.pipeline_mode<synchronous>, transform_indices = @transform_0, window_bounds = array<i64: 2, 8, 32>}, {pipeline_mode = #tpu.pipeline_mode<synchronous>, transform_indices = @transform_1, window_bounds = array<i64: 128, 128>}, {pipeline_mode = #tpu.pipeline_mode<synchronous>, transform_indices = @transform_2, window_bounds = array<i64: 8, 128>}, {pipeline_mode = #tpu.pipeline_mode<synchronous>, transform_indices = @transform_3, window_bounds = array<i64: 2, 64>}]} {
    %c0 = arith.constant 0 : index
    %c0_0 = arith.constant 0 : index
    %0 = vector.load %arg3[%c0, %c0_0] : memref<128x128xf32, #tpu.memory_space<vmem>>, vector<32x32xf32>
    %c32 = arith.constant 32 : index
    %c0_1 = arith.constant 0 : index
    %1 = vector.load %arg3[%c32, %c0_1] : memref<128x128xf32, #tpu.memory_space<vmem>>, vector<32x2xf32>
    %c0_2 = arith.constant 0 : index
    %c0_3 = arith.constant 0 : index
    %2 = vector.load %arg4[%c0_2, %c0_3] : memref<8x128xf32, #tpu.memory_space<vmem>>, vector<1x32xf32>
    %c1 = arith.constant 1 : index
    %c0_4 = arith.constant 0 : index
    %3 = vector.load %arg4[%c1, %c0_4] : memref<8x128xf32, #tpu.memory_space<vmem>>, vector<1x2xf32>
    %c2 = arith.constant 2 : index
    %c0_5 = arith.constant 0 : index
    %4 = vector.load %arg4[%c2, %c0_5] : memref<8x128xf32, #tpu.memory_space<vmem>>, vector<1x64xf32>
    %c0_6 = arith.constant 0 : index
    %c0_7 = arith.constant 0 : index
    %c0_8 = arith.constant 0 : index
    %5 = vector.load %arg2[%c0_6, %c0_7, %c0_8] : memref<2x8x32xf32, #tpu.memory_space<vmem>>, vector<2x8x32xf32>
    %6 = vector.shape_cast %5 : vector<2x8x32xf32> to vector<16x32xf32>
    %cst = arith.constant dense<0.000000e+00> : vector<16x32xf32>
    %7 = tpu.matmul %6, %0, %cst {dimension_numbers = #tpu.dot_dimension_numbers<[1], [0], [0], [1], [0, 0, 1, 1], [], []>} : vector<16x32xf32>, vector<32x32xf32>, vector<16x32xf32> -> vector<16x32xf32>
    %8 = vector.broadcast %2 : vector<1x32xf32> to vector<16x32xf32>
    %9 = arith.addf %7, %8 : vector<16x32xf32>
    %cst_9 = arith.constant 0.000000e+00 : f32
    %10 = vector.broadcast %cst_9 : f32 to vector<16x32xf32>
    %11 = arith.maximumf %9, %10 : vector<16x32xf32>
    %cst_10 = arith.constant dense<0.000000e+00> : vector<16x2xf32>
    %12 = tpu.matmul %11, %1, %cst_10 {dimension_numbers = #tpu.dot_dimension_numbers<[1], [0], [0], [1], [0, 0, 1, 1], [], []>} : vector<16x32xf32>, vector<32x2xf32>, vector<16x2xf32> -> vector<16x2xf32>
    %13 = vector.broadcast %3 : vector<1x2xf32> to vector<16x2xf32>
    %14 = arith.addf %12, %13 : vector<16x2xf32>
    %15 = tpu.iota {dimensions = array<i32: 0>} : vector<8x2xi32>
    %16 = vector.extract_strided_slice %14 {offsets = [0, 0], sizes = [8, 2], strides = [1, 1]} : vector<16x2xf32> to vector<8x2xf32>
    %c0_11 = arith.constant 0 : index
    %17 = memref.load %arg1[%c0_11] : memref<2xi32, #tpu.memory_space<smem>>
    %18 = vector.broadcast %17 : i32 to vector<8x2xi32>
    %19 = arith.cmpi slt, %15, %18 : vector<8x2xi32>
    %cst_12 = arith.constant -1.000000e+09 : f32
    %20 = vector.broadcast %cst_12 : f32 to vector<8x2xf32>
    %21 = arith.select %19, %16, %20 : vector<8x2xi1>, vector<8x2xf32>
    %cst_13 = arith.constant dense<0xFF800000> : vector<2xf32>
    %22 = vector.multi_reduction <maximumf>, %21, %cst_13 [0] : vector<8x2xf32> to vector<2xf32>
    %23 = vector.shape_cast %22 : vector<2xf32> to vector<1x2xf32>
    %24 = vector.broadcast %23 : vector<1x2xf32> to vector<8x2xf32>
    %25 = arith.subf %21, %24 : vector<8x2xf32>
    %26 = math.exp %25 : vector<8x2xf32>
    %cst_14 = arith.constant dense<0.000000e+00> : vector<2xf32>
    %27 = vector.multi_reduction <add>, %26, %cst_14 [0] : vector<8x2xf32> to vector<2xf32>
    %28 = vector.shape_cast %27 : vector<2xf32> to vector<1x2xf32>
    %29 = vector.broadcast %28 : vector<1x2xf32> to vector<8x2xf32>
    %30 = arith.divf %26, %29 : vector<8x2xf32>
    %31 = vector.extract_strided_slice %5 {offsets = [0, 0, 0], sizes = [1, 8, 32], strides = [1, 1, 1]} : vector<2x8x32xf32> to vector<1x8x32xf32>
    %32 = vector.shape_cast %31 : vector<1x8x32xf32> to vector<8x32xf32>
    %33 = vector.extract_strided_slice %30 {offsets = [0, 0], sizes = [8, 1], strides = [1, 1]} : vector<8x2xf32> to vector<8x1xf32>
    %34 = vector.broadcast %33 : vector<8x1xf32> to vector<8x32xf32>
    %35 = arith.mulf %34, %32 : vector<8x32xf32>
    %cst_15 = arith.constant dense<0.000000e+00> : vector<32xf32>
    %36 = vector.multi_reduction <add>, %35, %cst_15 [0] : vector<8x32xf32> to vector<32xf32>
    %37 = vector.shape_cast %36 : vector<32xf32> to vector<1x32xf32>
    %c64 = arith.constant 64 : index
    %c0_16 = arith.constant 0 : index
    %38 = vector.load %arg3[%c64, %c0_16] : memref<128x128xf32, #tpu.memory_space<vmem>>, vector<32x64xf32>
    %cst_17 = arith.constant dense<0.000000e+00> : vector<1x64xf32>
    %39 = tpu.matmul %37, %38, %cst_17 {dimension_numbers = #tpu.dot_dimension_numbers<[1], [0], [0], [1], [0, 0, 1, 1], [], []>} : vector<1x32xf32>, vector<32x64xf32>, vector<1x64xf32> -> vector<1x64xf32>
    %40 = arith.addf %4, %39 : vector<1x64xf32>
    %41 = vector.extract_strided_slice %30 {offsets = [0, 1], sizes = [8, 1], strides = [1, 1]} : vector<8x2xf32> to vector<8x1xf32>
    %42 = vector.broadcast %41 : vector<8x1xf32> to vector<8x32xf32>
    %43 = arith.mulf %42, %32 : vector<8x32xf32>
    %cst_18 = arith.constant dense<0.000000e+00> : vector<32xf32>
    %44 = vector.multi_reduction <add>, %43, %cst_18 [0] : vector<8x32xf32> to vector<32xf32>
    %45 = vector.shape_cast %44 : vector<32xf32> to vector<1x32xf32>
    %c96 = arith.constant 96 : index
    %c0_19 = arith.constant 0 : index
    %46 = vector.load %arg3[%c96, %c0_19] : memref<128x128xf32, #tpu.memory_space<vmem>>, vector<32x64xf32>
    %cst_20 = arith.constant dense<0.000000e+00> : vector<1x64xf32>
    %47 = tpu.matmul %45, %46, %cst_20 {dimension_numbers = #tpu.dot_dimension_numbers<[1], [0], [0], [1], [0, 0, 1, 1], [], []>} : vector<1x32xf32>, vector<32x64xf32>, vector<1x64xf32> -> vector<1x64xf32>
    %48 = arith.addf %40, %47 : vector<1x64xf32>
    %49 = vector.extract_strided_slice %14 {offsets = [8, 0], sizes = [8, 2], strides = [1, 1]} : vector<16x2xf32> to vector<8x2xf32>
    %c1_21 = arith.constant 1 : index
    %50 = memref.load %arg1[%c1_21] : memref<2xi32, #tpu.memory_space<smem>>
    %51 = vector.broadcast %50 : i32 to vector<8x2xi32>
    %52 = arith.cmpi slt, %15, %51 : vector<8x2xi32>
    %cst_22 = arith.constant -1.000000e+09 : f32
    %53 = vector.broadcast %cst_22 : f32 to vector<8x2xf32>
    %54 = arith.select %52, %49, %53 : vector<8x2xi1>, vector<8x2xf32>
    %cst_23 = arith.constant dense<0xFF800000> : vector<2xf32>
    %55 = vector.multi_reduction <maximumf>, %54, %cst_23 [0] : vector<8x2xf32> to vector<2xf32>
    %56 = vector.shape_cast %55 : vector<2xf32> to vector<1x2xf32>
    %57 = vector.broadcast %56 : vector<1x2xf32> to vector<8x2xf32>
    %58 = arith.subf %54, %57 : vector<8x2xf32>
    %59 = math.exp %58 : vector<8x2xf32>
    %cst_24 = arith.constant dense<0.000000e+00> : vector<2xf32>
    %60 = vector.multi_reduction <add>, %59, %cst_24 [0] : vector<8x2xf32> to vector<2xf32>
    %61 = vector.shape_cast %60 : vector<2xf32> to vector<1x2xf32>
    %62 = vector.broadcast %61 : vector<1x2xf32> to vector<8x2xf32>
    %63 = arith.divf %59, %62 : vector<8x2xf32>
    %64 = vector.extract_strided_slice %5 {offsets = [1, 0, 0], sizes = [1, 8, 32], strides = [1, 1, 1]} : vector<2x8x32xf32> to vector<1x8x32xf32>
    %65 = vector.shape_cast %64 : vector<1x8x32xf32> to vector<8x32xf32>
    %66 = vector.extract_strided_slice %63 {offsets = [0, 0], sizes = [8, 1], strides = [1, 1]} : vector<8x2xf32> to vector<8x1xf32>
    %67 = vector.broadcast %66 : vector<8x1xf32> to vector<8x32xf32>
    %68 = arith.mulf %67, %65 : vector<8x32xf32>
    %cst_25 = arith.constant dense<0.000000e+00> : vector<32xf32>
    %69 = vector.multi_reduction <add>, %68, %cst_25 [0] : vector<8x32xf32> to vector<32xf32>
    %70 = vector.shape_cast %69 : vector<32xf32> to vector<1x32xf32>
    %c64_26 = arith.constant 64 : index
    %c0_27 = arith.constant 0 : index
    %71 = vector.load %arg3[%c64_26, %c0_27] : memref<128x128xf32, #tpu.memory_space<vmem>>, vector<32x64xf32>
    %cst_28 = arith.constant dense<0.000000e+00> : vector<1x64xf32>
    %72 = tpu.matmul %70, %71, %cst_28 {dimension_numbers = #tpu.dot_dimension_numbers<[1], [0], [0], [1], [0, 0, 1, 1], [], []>} : vector<1x32xf32>, vector<32x64xf32>, vector<1x64xf32> -> vector<1x64xf32>
    %73 = arith.addf %4, %72 : vector<1x64xf32>
    %74 = vector.extract_strided_slice %63 {offsets = [0, 1], sizes = [8, 1], strides = [1, 1]} : vector<8x2xf32> to vector<8x1xf32>
    %75 = vector.broadcast %74 : vector<8x1xf32> to vector<8x32xf32>
    %76 = arith.mulf %75, %65 : vector<8x32xf32>
    %cst_29 = arith.constant dense<0.000000e+00> : vector<32xf32>
    %77 = vector.multi_reduction <add>, %76, %cst_29 [0] : vector<8x32xf32> to vector<32xf32>
    %78 = vector.shape_cast %77 : vector<32xf32> to vector<1x32xf32>
    %c96_30 = arith.constant 96 : index
    %c0_31 = arith.constant 0 : index
    %79 = vector.load %arg3[%c96_30, %c0_31] : memref<128x128xf32, #tpu.memory_space<vmem>>, vector<32x64xf32>
    %cst_32 = arith.constant dense<0.000000e+00> : vector<1x64xf32>
    %80 = tpu.matmul %78, %79, %cst_32 {dimension_numbers = #tpu.dot_dimension_numbers<[1], [0], [0], [1], [0, 0, 1, 1], [], []>} : vector<1x32xf32>, vector<32x64xf32>, vector<1x64xf32> -> vector<1x64xf32>
    %81 = arith.addf %73, %80 : vector<1x64xf32>
    %82 = tpu.concatenate %48, %81 in 0 : vector<1x64xf32>, vector<1x64xf32> -> vector<2x64xf32>
    %c0_33 = arith.constant 0 : index
    %c0_34 = arith.constant 0 : index
    %83 = vector.load %arg5[%c0_33, %c0_34] : memref<2x64xf32, #tpu.memory_space<vmem>>, vector<2x64xf32>
    tpu.vector_store %arg5[%c0_33, %c0_34], %82 {strides = array<i32>} : memref<2x64xf32, #tpu.memory_space<vmem>>, vector<2x64xf32>,
    return
  }
  func.func @transform_0(%arg0: i32, %arg1: memref<2xi32, #tpu.memory_space<smem>>) -> (i32, i32, i32) {
    %c0_i32 = arith.constant 0 : i32
    %c0_i32_0 = arith.constant 0 : i32
    %c0_i32_1 = arith.constant 0 : i32
    %c0_i32_2 = arith.constant 0 : i32
    return %c0_i32, %c0_i32_0, %c0_i32_1 : i32, i32, i32
  }
  func.func @transform_1(%arg0: i32, %arg1: memref<2xi32, #tpu.memory_space<smem>>) -> (i32, i32) {
    %c0_i32 = arith.constant 0 : i32
    %c0_i32_0 = arith.constant 0 : i32
    %c0_i32_1 = arith.constant 0 : i32
    return %c0_i32, %c0_i32_0 : i32, i32
  }
  func.func @transform_2(%arg0: i32, %arg1: memref<2xi32, #tpu.memory_space<smem>>) -> (i32, i32) {
    %c0_i32 = arith.constant 0 : i32
    %c0_i32_0 = arith.constant 0 : i32
    %c0_i32_1 = arith.constant 0 : i32
    return %c0_i32, %c0_i32_0 : i32, i32
  }
  func.func @transform_3(%arg0: i32, %arg1: memref<2xi32, #tpu.memory_space<smem>>) -> (i32, i32) {
    %c0_i32 = arith.constant 0 : i32
    %c0_i32_0 = arith.constant 0 : i32
    %c0_i32_1 = arith.constant 0 : i32
    return %c0_i32, %c0_i32_0 : i32, i32
  }
}

</mosaic_0001>

<bundles_post_ra>
// kernel: tpu_custom_call.1
= control target key start
LH: loop header
LB: loop body
LE: loop exit
PB: predicated region body
PF: predicated region fallthrough
CT: control target
= control target key end

     0   :  { %s1054_s0 = inlined_call_operand.hbm [shape: s32[2], index: 0, kind: input, shape index: {}]   ;;  %s1055_s1 = inlined_call_operand.hbm [shape: f32[2,8,32], index: 1, kind: input, shape index: {}]   ;;  %s1056_s2 = inlined_call_operand.hbm [shape: f32[128,128], index: 2, kind: input, shape index: {}]   ;;  %s1057_s3 = inlined_call_operand.vmem [shape: f32[8,128], index: 3, kind: input, shape index: {}]   ;;  %s1058_s4 = inlined_call_operand.hbm [shape: f32[2,64], index: 4, kind: output, shape index: {}]  }
   0x1   :  { %s837_s17 = scalar_lea.hbm %s1054_s0, 16 }
   0x2   :  { %p838_p0 = scmp.ne.s32.totalorder %s1054_s0, %s837_s17  ;;  %p841_p1 = scmp.lt.u32.totalorder %s837_s17, %s1054_s0 }
   0x4   :  { %p843_p2 = pnand %p841_p1, %p838_p0 }
   0x6   :  { %846 = shalt.err (!%p843_p2)  }
   0x7   :  { %s921_s22 = smov [#allocation3]  }
   0x8   :  { %10 = dma.hbm_to_smem %s1054_s0, 16, %s921_s22, [#allocation2] }
   0x9   :  { %913 = dma.done.wait [#allocation2], 16 }
   0xa   :  { %914 = vsyncadd [#allocation2], 4294967280 }
   0xb   :  { %12 = sfence }
   0xc   :  { %13 = vsyncpa [#allocation5], 0 }
   0xd   :  { %14 = vsyncpa [#allocation8], 0 }
   0xe   :  { %15 = vsyncpa [#allocation6], 0  ;;  %s922_s25 = smov [#allocation4]   ;;  %s847_s29 = scalar_lea.hbm %s1055_s1, 256 }
   0xf   :  { %s21_s26 = sshll.u32 %s922_s25, 4  ;;  %p848_p3 = scmp.ne.s32.totalorder %s1055_s1, %s847_s29  ;;  %s22_s26 = int_to_ptr.vmem [resolvable:$true] %s21_s26 }
  0x10   :  { %p851_p4 = scmp.lt.u32.totalorder %s847_s29, %s1055_s1 }
  0x12   :  { %p853_p5 = pnand %p851_p4, %p848_p3 }
  0x14   :  { %856 = shalt.err (!%p853_p5)
}
  0x15   :  { %s857_s0 = scalar_lea.vmem %s22_s26, 256  ;;  %p862_p7 = scmp.lt.s32.totalorder %s22_s26, %s22_s26 }
  0x16   :  { %p858_p6 = scmp.ne.s32.totalorder %s22_s26, %s857_s0  ;;  %p863_p8 = scmp.lt.s32.totalorder %s857_s0, %s857_s0 }
  0x18   :  { %p864_p9 = por %p863_p8, %p862_p7 }
  0x1a   :  { %p865_p10 = pnand %p864_p9, %p858_p6 }
  0x1c   :  { %868 = shalt.err (!%p865_p10)
}
  0x1d   :  { %s923_s8 = smov 128   ;;  %s924_s9 = smov 8  }
  0x1e   :  { %27 = dma.hbm_to_vmem [thread:$0]  %s1055_s1, 256, %s22_s26, [#allocation5], %s923_s8, %s923_s8, %s924_s9  }
  0x1f   :  { %s925_s12 = smov [#allocation7]   ;;  %s869_s16 = scalar_lea.hbm %s1056_s2, 2048 }
  0x20   :  { %s33_s13 = sshll.u32 %s925_s12, 4  ;;  %p870_p11 = scmp.ne.s32.totalorder %s1056_s2, %s869_s16  ;;  %s34_s13 = int_to_ptr.vmem [resolvable:$true] %s33_s13 }
  0x21   :  { %p873_p12 = scmp.lt.u32.totalorder %s869_s16, %s1056_s2 }
  0x23   :  { %p875_p13 = pnand %p873_p12, %p870_p11 }
  0x25   :  { %878 = shalt.err (!%p875_p13)
}
  0x26   :  { %s879_s21 = scalar_lea.vmem %s34_s13, 2048  ;;  %p884_p1 = scmp.lt.s32.totalorder %s34_s13, %s34_s13 }
  0x27   :  { %p880_p0 = scmp.ne.s32.totalorder %s34_s13, %s879_s21  ;;  %p885_p2 = scmp.lt.s32.totalorder %s879_s21, %s879_s21 }
  0x29   :  { %p886_p3 = por %p885_p2, %p884_p1 }
  0x2b   :  { %p887_p4 = pnand %p886_p3, %p880_p0 }
  0x2d   :  { %890 = shalt.err (!%p887_p4)
}
  0x2e   :  { %39 = dma.hbm_to_vmem [thread:$0]  %s1056_s2, 2048, %s34_s13, [#allocation8], %s923_s8, %s923_s8, %s924_s9  }
  0x2f   :  { %915 = dma.done.wait [#allocation5], 256  }
  0x30   :  { %916 = vsyncadd [#allocation5], 4294967040 }
  0x31   :  { %917 = dma.done.wait [#allocation8], 2048  }
  0x32   :  { %918 = vsyncadd [#allocation8], 4294965248  ;;  %vm65_vm0 = vcmask 261120   ;;  %v48_v0 = vld [vmem:[#allocation7] sm:$0xff]  ;;  %v49_v1 = vld [vmem:[#allocation7 + $0x8] sm:$0xff]  ;;  %v926_v21 = vmov 1   ;;  %v234_v23 = vlaneseq }
  0x33   :  { %v50_v2 = vld [vmem:[#allocation7 + $0x10] sm:$0xff]  ;;  %v769_v3 = vpack.c.bf16 %v49_v1, %v48_v0  ;;  %v51_v4 = vld [vmem:[#allocation7 + $0x18] sm:$0xff]  ;;  %v52_v7 = vld [vmem:[#allocation7 + $0x20] sm:$0xff]  ;;  %827 = vset.pattern.permute.xlu1 %v926_v21  ;;  %v927_v22 = vmov 0   ;;  %s668_s24 = sld [smem:[#allocation3 + $0x1]]  ;;  %s236_s25 = sld [smem:[#allocation3]] }
  0x34   :  { %v993_v5 = vld [vmem:[#allocation4] sm:$0xff]  ;;  %v773_v6 = vpack.c.bf16 %v51_v4, %v50_v2  ;;  %v53_v8 = vld [vmem:[#allocation7 + $0x28] sm:$0xff]  ;;  %v997_v10 = vld [vmem:[#allocation4 + $0x8] sm:$0xff]  ;;  %826 = vset.pattern.permute.xlu0 %v927_v22  ;;  %v235_v24 = vshrl.u32 %v234_v23, 7  ;;  %vm240_vm2 = vcmask 15360   ;;  %vm929_vm4 = vmmov 0  }
  0x35   :  { %711 = vmatprep.mubr.msk.f32.mxu0 %vm65_vm0, %v993_v5  ;;  %770 = vmatprep.subr.bf16.mxu0 %v769_v3  ;;  %v777_v9 = vpack.c.bf16 %v53_v8, %v52_v7  ;;  %v54_v11 = vld [vmem:[#allocation7 + $0x30] sm:$0xff]  ;;  %v55_v12 = vld [vmem:[#allocation7 + $0x38] sm:$0xff]  ;;  %v660_v14 = vld [vmem:[%s1057_s3] ss:$0 sm:$0xff]  ;;  %s931_s30 = smov [#allocation9]   ;;  %vm640_vm5 = vcmask 1040384  }
  0x36   :  { %772 = vmatpush3.bf16.msra.mxu0 %v769_v3  ;;  %v781_v13 = vpack.c.bf16 %v55_v12, %v54_v11  ;;  %v663_v26 = vld [vmem:[%s1057_s3 + $0x1] ss:$0 sm:$0xff]  ;;  %s650_s5 = sshll.u32 %s931_s30, 4  ;;  %vm642_vm6 = vcmask 517120   ;;  %s651_s5 = int_to_ptr.vmem [resolvable:$true] %s650_s5 }
  0x37   :  { %774 = vmatprep.subr.bf16.mxu0 %v773_v6  ;;  %778 = vmatprep.subr.bf16.mxu1 %v777_v9  ;;  %v274_v11 = vld [vmem:[#allocation7 + $0x48] sm:$0xff]  ;;  %s891_s6 = scalar_lea.vmem %s651_s5, 32  ;;  %p896_p6 = scmp.lt.s32.totalorder %s651_s5, %s651_s5 }
  0x38   :  { %780 = vmatpush3.bf16.msra.mxu1 %v777_v9  ;;  %v273_v9 = vld [vmem:[#allocation7 + $0x40] sm:$0xff]  ;;  %p892_p5 = scmp.ne.s32.totalorder %s651_s5, %s891_s6  ;;  %p897_p7 = scmp.lt.s32.totalorder %s891_s6, %s891_s6 }
  0x39   :  { %782 = vmatprep.subr.bf16.mxu1 %v781_v13  ;;  %v442_v25 = vstv %s668_s24  ;;  %v237_v27 = vstv %s236_s25  ;;  %v786_v12 = vpack.c.bf16 %v274_v11, %v273_v9 }
  0x3a   :  { %776 = vmatpush3.bf16.msra.mxu0 %v773_v6  ;;  %vm443_vm1 = vcmp.lt.s32.totalorder %v235_v24, %v442_v25  ;;  %vm238_vm3 = vcmp.lt.s32.totalorder %v235_v24, %v237_v27  ;;  %p898_p8 = por %p897_p7, %p896_p6 }
  0x3c   :  { %784 = vmatpush3.bf16.msra.mxu1 %v781_v13  ;;  %v928_v13 = vmov 0.0|0.0   ;;  %p899_p9 = pnand %p898_p8, %p892_p5 }
  0x3d   :  { %712 = vmatmul.mubr.msk.f32.vlgmr.msra.gmra.mrb[0].mxu0 %vm65_vm0, %v997_v10  ;;  %797 = vmatprep.subr.bf16.mxu1 %v928_v13 }
  0x3e   :  { %785 = vmatprep.subr.bf16.mxu0 %v928_v13 }
  0x3f   :  { %787 = vmatpush3.bf16.msra.mxu0 %v786_v12 }
  0x40   :  { %788 = vmatprep.subr.bf16.mxu0 %v928_v13 }
 0x110   :  { %v713_v15 = vpop.f32.mrb[0].mxu0 }
 0x111   :  { %v144_v16 = vadd.f32 %v713_v15, %v660_v14  ;;  %v138_v17 = vpop.f32.mrb[1].mxu0  ;;  %v276_v15 = vld [vmem:[#allocation7 + $0x58] sm:$0xff] }
 0x112   :  { %v139_v18 = vadd.f32 %v660_v14, %v138_v17  ;;  %v275_v14 = vld [vmem:[#allocation7 + $0x50] sm:$0xff]  ;;  %v930_v17 = vmov 0.0  }
 0x113   :  { %v148_v20 = vmax.f32 %v144_v16, 0.0  ;;  %v789_v16 = vpack.c.bf16 %v276_v15, %v275_v14  ;;  %733 = vmatprep.mubr.msk.f32.mxu0 %vm929_vm4, %v930_v17 }
 0x114   :  { %v147_v19 = vmax.f32 %v139_v18, 0.0 }
 0x115   :  { %790 = vmatpush3.bf16.msra.mxu0 %v789_v16 }
 0x116   :  { %722 = vmatprep.mubr.msk.f32.mxu1 %vm65_vm0, %v147_v19  ;;  %791 = vmatprep.subr.bf16.mxu0 %v928_v13 }
 0x117   :  { %723 = vmatmul.mubr.msk.f32.vlgmr.msra.gmra.mrb[0].mxu1 %vm65_vm0, %v148_v20 }
 0x118   :  { %799 = vmatpush3.bf16.msra.mxu1 %v786_v12  ;;  %755 = vmatprep.mubr.msk.f32.mxu1 %vm929_vm4, %v930_v17 }
 0x119   :  { %800 = vmatprep.subr.bf16.mxu1 %v928_v13 }
 0x11c   :  { %802 = vmatpush3.bf16.msra.mxu1 %v789_v16 }
 0x11d   :  { %803 = vmatprep.subr.bf16.mxu1 %v928_v13 }
 0x1ea   :  { %v724_v28 = vpop.f32.mrb[0].mxu1 }
 0x1eb   :  { %v231_v29 = vadd.f32 %v724_v28, %v663_v26  ;;  %v225_v30 = vpop.f32.mrb[1].mxu1 }
 0x1ec   :  { %v226_v31 = vadd.f32 %v663_v26, %v225_v30 }
 0x1ed   :  { %v444_v32 = vsel %vm443_vm1, %v231_v29, -1e+09 }
 0x1ee   :  { %v445_v33 = vsel %vm240_vm2, %v444_v32, -inf  ;;  %v239_v34 = vsel %vm238_vm3, %v226_v31, -1e+09 }
 0x1ef   :  { %v446_v35 = vrot.slane %v445_v33, 4  ;;  %v241_v36 = vsel %vm240_vm2, %v239_v34, -inf }
 0x1f0   :  { %v242_v37 = vrot.slane %v241_v36, 4 }
 0x1f1   :  { %v447_v38 = vmax.f32 %v445_v33, %v446_v35 }
 0x1f2   :  { %v243_v39 = vmax.f32 %v241_v36, %v242_v37 }
 0x1f3   :  { %v448_v40 = vrot.slane %v447_v38, 2 }
 0x1f4   :  { %v244_v41 = vrot.slane %v243_v39, 2 }
 0x1f5   :  { %v449_v42 = vmax.f32 %v447_v38, %v448_v40  ;;  %v363_v40 = vld [vmem:[#allocation7 + $0x60] sm:$0xff] }
 0x1f6   :  { %v245_v43 = vmax.f32 %v243_v39, %v244_v41  ;;  %v364_v41 = vld [vmem:[#allocation7 + $0x68] sm:$0xff] }
 0x1f7   :  { %v450_v44 = vrot.slane %v449_v42, 1 }
 0x1f8   :  { %v246_v45 = vrot.slane %v245_v43, 1 }
 0x1f9   :  { %v451_v46 = vmax.f32 %v449_v42, %v450_v44  ;;  %v792_v44 = vpack.c.bf16 %v364_v41, %v363_v40 }
 0x1fa   :  { %v247_v47 = vmax.f32 %v245_v43, %v246_v45 }
 0x1fb   :  { %v452_v48 = vsub.f32 %v444_v32, %v451_v46 }
 0x1fc   :  { %v248_v49 = vsub.f32 %v239_v34, %v247_v47 }
 0x1fd   :  { %v453_v50 = vmul.f32 1.442695, %v452_v48  ;;  %v365_v48 = vld [vmem:[#allocation7 + $0x70] sm:$0xff] }
 0x1fe   :  { %v249_v51 = vmul.f32 1.442695, %v248_v49  ;;  %v366_v49 = vld [vmem:[#allocation7 + $0x78] sm:$0xff] }
 0x1ff   :  { %829 = vpow2.f32 %v453_v50 }
 0x200   :  { %831 = vpow2.f32 %v249_v51  ;;  %v795_v51 = vpack.c.bf16 %v366_v49, %v365_v48 }
 0x209   :  { %v830_v52 = vpop.eup %829 }
 0x20a   :  { %v832_v53 = vpop.eup %831  ;;  %v455_v54 = vsel %vm240_vm2, %v830_v52, 0.0 }
 0x20b   :  { %v456_v55 = vrot.slane %v455_v54, 4  ;;  %v251_v56 = vsel %vm240_vm2, %v832_v53, 0.0 }
 0x20c   :  { %v252_v57 = vrot.slane %v251_v56, 4 }
 0x20d   :  { %v457_v58 = vadd.f32 %v456_v55, %v455_v54 }
 0x20e   :  { %v253_v59 = vadd.f32 %v252_v57, %v251_v56 }
 0x20f   :  { %v458_v60 = vrot.slane %v457_v58, 2 }
 0x210   :  { %v254_v61 = vrot.slane %v253_v59, 2 }
 0x211   :  { %v459_v62 = vadd.f32 %v458_v60, %v457_v58  ;;  %v58_v58 = vld [vmem:[%s1057_s3 + $0x2] sm:$0x1] }
 0x212   :  { %v255_v63 = vadd.f32 %v254_v61, %v253_v59 }
 0x213   :  { %v460_v0 = vrot.slane %v459_v62, 1 }
 0x214   :  { %v256_v1 = vrot.slane %v255_v63, 1 }
 0x215   :  { %v461_v2 = vadd.f32 %v460_v0, %v459_v62 }
 0x216   :  { %v257_v3 = vadd.f32 %v256_v1, %v255_v63 }
 0x217   :  { %833 = vrcp.f32 %v461_v2 }
 0x218   :  { %835 = vrcp.f32 %v257_v3 }
 0x221   :  { %v834_v4 = vpop.eup %833 }
 0x222   :  { %v463_v6 = vmul.f32 %v834_v4, %v830_v52  ;;  %v836_v7 = vpop.eup %835 }
 0x223   :  { %v259_v8 = vmul.f32 %v836_v7, %v832_v53 }
 0x224   :  { %552 = vperm.xlu1 %827, %v463_v6   ;;  %466 = vperm.xlu0 %826, %v463_v6  }
 0x228   :  { %352 = vperm.xlu1 %827, %v259_v8   ;;  %262 = vperm.xlu0 %826, %v259_v8  }
 0x22c   :  { %828 = vset.pattern.permute.xlu0 %v926_v21 }
 0x2a3   :  { %v553_v18 = vpop.permute.xlu1 %552  ;;  %v467_v19 = vpop.permute.xlu0 %466 }
 0x2a4   :  { %v555_v20 = vmul.f32 %v553_v18, %v997_v10  ;;  %v469_v22 = vmul.f32 %v467_v19, %v997_v10 }
 0x2a6   :  { %v556_v21 = vsel %vm65_vm0, %v555_v20, 0.0  ;;  %v470_v23 = vsel %vm65_vm0, %v469_v22, 0.0 }
 0x2a7   :  { %v557_v24 = vrot.slane %v556_v21, 4  ;;  %v471_v25 = vrot.slane %v470_v23, 4  ;;  %v353_v26 = vpop.permute.xlu1 %352  ;;  %v263_v27 = vpop.permute.xlu0 %262 }
 0x2a8   :  { %v355_v28 = vmul.f32 %v353_v26, %v993_v5  ;;  %v265_v29 = vmul.f32 %v263_v27, %v993_v5 }
 0x2a9   :  { %v558_v30 = vadd.f32 %v557_v24, %v556_v21  ;;  %v472_v31 = vadd.f32 %v471_v25, %v470_v23 }
 0x2aa   :  { %v356_v32 = vsel %vm65_vm0, %v355_v28, 0.0  ;;  %v266_v33 = vsel %vm65_vm0, %v265_v29, 0.0 }
 0x2ab   :  { %v473_v34 = vrot.slane %v472_v31, 2  ;;  %v357_v10 = vrot.slane %v356_v32, 4  ;;  %v267_v35 = vrot.slane %v266_v33, 4  ;;  %v559_v36 = vrot.slane %v558_v30, 2 }
 0x2ad   :  { %v474_v37 = vadd.f32 %v473_v34, %v472_v31  ;;  %v358_v38 = vadd.f32 %v357_v10, %v356_v32  ;;  %v268_v39 = vadd.f32 %v267_v35, %v266_v33  ;;  %v560_v45 = vadd.f32 %v559_v36, %v558_v30 }
 0x2af   :  { %v475_v42 = vrot.slane %v474_v37, 1  ;;  %v269_v43 = vrot.slane %v268_v39, 2  ;;  %v359_v46 = vrot.slane %v358_v38, 2  ;;  %v561_v52 = vrot.slane %v560_v45, 1 }
 0x2b1   :  { %v476_v5 = vadd.f32 %v475_v42, %v474_v37  ;;  %v270_v47 = vadd.f32 %v269_v43, %v268_v39  ;;  %v360_v53 = vadd.f32 %v359_v46, %v358_v38  ;;  %v562_v55 = vadd.f32 %v561_v52, %v560_v45 }
 0x2b3   :  { %v271_v50 = vrot.slane %v270_v47, 1  ;;  %756 = vmatmul.mubr.msk.f32.vlgmr.msra.gmra.mrb[2].mxu1 %vm65_vm0, %v476_v5  ;;  %v361_v56 = vrot.slane %v360_v53, 1 }
 0x2b4   :  { %805 = vmatpush3.bf16.msra.mxu1 %v792_v44  ;;  %766 = vmatprep.mubr.msk.f32.mxu1 %vm929_vm4, %v930_v17 }
 0x2b5   :  { %v272_v54 = vadd.f32 %v271_v50, %v270_v47  ;;  %806 = vmatprep.subr.bf16.mxu1 %v928_v13  ;;  %v362_v57 = vadd.f32 %v361_v56, %v360_v53 }
 0x2b7   :  { %734 = vmatmul.mubr.msk.f32.vlgmr.msra.gmra.mrb[2].mxu0 %vm65_vm0, %v272_v54 }
 0x2b8   :  { %793 = vmatpush3.bf16.msra.mxu0 %v792_v44  ;;  %808 = vmatpush3.bf16.msra.mxu1 %v795_v51 }
 0x2b9   :  { %794 = vmatprep.subr.bf16.mxu0 %v928_v13  ;;  %744 = vmatprep.mubr.msk.f32.mxu0 %vm929_vm4, %v930_v17 }
 0x2bb   :  { %767 = vmatmul.mubr.msk.f32.vlgmr.msra.gmra.mrb[2].mxu1 %vm65_vm0, %v562_v55 }
 0x2bc   :  { %796 = vmatpush3.bf16.msra.mxu0 %v795_v51 }
 0x2bf   :  { %745 = vmatmul.mubr.msk.f32.vlgmr.msra.gmra.mrb[2].mxu0 %vm65_vm0, %v362_v57 }
 0x38e   :  { %v632_v59 = vpop.f32.mrb[2].mxu1 }
 0x38f   :  { %v810_v60 = vadd.f32 %v632_v59, %v58_v58  ;;  %v768_v61 = vpop.f32.mrb[3].mxu1 }
 0x391   :  { %v638_v63 = vrot.slane %v810_v60, 7 }
 0x392   :  { %v436_v62 = vpop.f32.mrb[2].mxu0 }
 0x393   :  { %v809_v0 = vadd.f32 %v436_v62, %v58_v58  ;;  %v746_v1 = vpop.f32.mrb[3].mxu0 }
 0x395   :  { %v641_v2 = vsel %vm640_vm5, %v809_v0, %v638_v63 }
 0x396   :  { %643 = vst.msk [vmem:[#allocation9] sm:$0x3] %vm642_vm6, %v641_v2 }
 0x397   :  { %902 = shalt.err (!%p899_p9)
}
 0x398   :  { %s903_s0 = scalar_lea.hbm %s1058_s4, 32 }
 0x399   :  { %p904_p10 = scmp.ne.s32.totalorder %s1058_s4, %s903_s0  ;;  %p907_p11 = scmp.lt.u32.totalorder %s903_s0, %s1058_s4 }
 0x39b   :  { %p909_p12 = pnand %p907_p11, %p904_p10 }
 0x39d   :  { %912 = shalt.err (!%p909_p12)
}
 0x39e   :  { %653 = dma.vmem_to_hbm [thread:$0]  %s651_s5, 32, %s1058_s4, [#allocation6]  }
 0x39f   :  { %919 = dma.done.wait [#allocation6], 32  }
 0x3a0   :  { %920 = vsyncadd [#allocation6], 4294967264 }
 0x3a1   :  { %657 = vsyncpa [#allocation5], 1 }
 0x3a2   :  { %658 = vsyncpa [#allocation8], 1 }
 0x3a3   :  { %659 = vsyncpa [#allocation6], 1 }

</bundles_post_ra>
